<compile_context>
chip_gen: v7x
topology: tpu7x:2x2x1
jax: 0.10.0
libtpu: 0.0.40
codegen_flags: <defaults>
</compile_context>

<pallas_src>
import jax
import jax.numpy as jnp
from jax.experimental import pallas as pl
from jax.experimental.pallas import tpu as pltpu  # noqa: F401  (TPU backend)


# ---------------------------------------------------------------------------
# Packed-parameter layout: one (64, 128) f32 buffer, all params in lane tile 0.
#   rows 0:60, cols 0:10  -> w2   (60, 10)
#   rows 0:60, col  10    -> b2   (60, 1)
#   rows 0:60, col  11    -> w3^T (60, 1)
#   rows 0:10, col  12    -> w1   (10, 1)
#   rows 0:10, col  13    -> b1   (10, 1)
#   row  0,    col  14    -> b3   (1, 1)
# ---------------------------------------------------------------------------
_PACK_ROWS = 64
_PACK_COLS = 128


def _sigmoid(z):
    # Exact: sigmoid(z) = 0.5 * (tanh(z/2) + 1)  -- single EUP push per element.
    return 0.5 * (jnp.tanh(0.5 * z) + 1.0)


def _mlp_kernel(x_ref, p_ref, o_ref):
    x = x_ref[...]                      # (1, Npad) f32, batch on lanes
    p = p_ref[...]                      # (64, 128) packed params

    w2 = p[0:60, 0:10]                  # (60, 10)
    b2 = p[0:60, 10:11]                 # (60, 1)
    w3 = p[0:60, 11:12]                 # (60, 1)   (already transposed)
    w1 = p[0:10, 12:13]                 # (10, 1)
    b1 = p[0:10, 13:14]                 # (10, 1)
    b3 = p[0:1, 14:15]                  # (1, 1)

    # Layer 1: Linear(1, 10).  K == 1 -> broadcast multiply on the VPU.
    h1 = _sigmoid(w1 * x + b1)                                          # (10, Npad)

    # Layer 2: Linear(10, 60).  Small contraction; a single dot.
    z2 = jnp.dot(w2, h1, preferred_element_type=jnp.float32) + b2       # (60, Npad)
    h2 = _sigmoid(z2)

    # Layer 3: Linear(60, 1).  Broadcast multiply + sublane (XLU) reduction.
    out = jnp.sum(w3 * h2, axis=0, keepdims=True) + b3                  # (1, Npad)

    o_ref[...] = out.astype(o_ref.dtype)


@jax.jit
def mlp_forward(x_lanes, packed_params):
    """x_lanes: (1, N) float32 with the batch on the lane axis.  Returns (1, N)."""
    n = x_lanes.shape[1]
    n_pad = ((n + 127) // 128) * 128
    if n_pad != n:
        x_lanes = jnp.pad(x_lanes, ((0, 0), (0, n_pad - n)))

    cost = pl.CostEstimate(
        flops=1400 * n_pad,                                   # layer-2 dot dominates
        transcendentals=70 * n_pad,                           # 10 + 60 tanh per sample
        bytes_accessed=2 * 4 * n_pad + _PACK_ROWS * _PACK_COLS * 4,
    )

    out = pl.pallas_call(
        _mlp_kernel,
        out_shape=jax.ShapeDtypeStruct((1, n_pad), jnp.float32),
        cost_estimate=cost,
    )(x_lanes, packed_params)

    if n_pad != n:
        out = out[:, :n]
    return out


# ---------------------------------------------------------------------------
# Parameter construction (PyTorch nn.Linear default init) + packing + reference
# ---------------------------------------------------------------------------
def init_params(key):
    """PyTorch-style shapes: w (out,in), b (out,)."""
    def linear(k, fan_in, fan_out):
        kw, kb = jax.random.split(k)
        bound = 1.0 / (fan_in ** 0.5)
        w = jax.random.uniform(kw, (fan_out, fan_in), jnp.float32, -bound, bound)
        b = jax.random.uniform(kb, (fan_out,), jnp.float32, -bound, bound)
        return w, b

    k1, k2, k3 = jax.random.split(key, 3)
    w1, b1 = linear(k1, 1, 10)     # (10, 1), (10,)
    w2, b2 = linear(k2, 10, 60)    # (60, 10), (60,)
    w3, b3 = linear(k3, 60, 1)     # (1, 60), (1,)
    return (w1, b1, w2, b2, w3, b3)


def pack_params(params):
    w1, b1, w2, b2, w3, b3 = params
    p = jnp.zeros((_PACK_ROWS, _PACK_COLS), jnp.float32)
    p = p.at[0:60, 0:10].set(w2)
    p = p.at[0:60, 10].set(b2)
    p = p.at[0:60, 11].set(w3[0])       # store w3 transposed as a column
    p = p.at[0:10, 12].set(w1[:, 0])
    p = p.at[0:10, 13].set(b1)
    p = p.at[0, 14].set(b3[0])
    return p


def reference_forward(x, params):
    """Plain-JAX reference with standard (N, features) row-major math."""
    w1, b1, w2, b2, w3, b3 = params
    h1 = jax.nn.sigmoid(x @ w1.T + b1)       # (N, 10)
    h2 = jax.nn.sigmoid(h1 @ w2.T + b2)      # (N, 60)
    return h2 @ w3.T + b3                    # (N, 1)


if __name__ == "__main__":
    key = jax.random.PRNGKey(0)
    kx, kp = jax.random.split(key)

    params = init_params(kp)
    packed = pack_params(params)

    # Small, lane-aligned batch (2 x 128 lanes); batch lives on the lane axis,
    # so no (N,1)<->(1,N) relayout around the kernel.  Same value range as the
    # PyTorch script's linspace(-9, 9, ...).
    N = 256
    x_lanes = jax.random.uniform(kx, (1, N), jnp.float32, -9.0, 9.0)

    out = mlp_forward(x_lanes, packed)
    out = jax.block_until_ready(out)

    ref = reference_forward(x_lanes.reshape(N, 1), params).reshape(1, N)
    assert out.shape == (1, N)
    assert jnp.allclose(out, ref, atol=1e-4, rtol=1e-4)

    print("KERNEL_OK")
</pallas_src>

<mosaic_0001>
module attributes {stable_mosaic.version = 11 : i64} {
  func.func @_mlp_kernel(%arg0: memref<1x256xf32, #tpu.memory_space<vmem>>, %arg1: memref<64x128xf32, #tpu.memory_space<vmem>>, %arg2: memref<1x256xf32, #tpu.memory_space<vmem>>) attributes {dimension_semantics = [], scalar_prefetch = 0 : i64, scratch_operands = 0 : i64, tpu.core_type = #tpu.core_type<tc>} {
    %c0 = arith.constant 0 : index
    %c0_0 = arith.constant 0 : index
    %0 = vector.load %arg0[%c0, %c0_0] : memref<1x256xf32, #tpu.memory_space<vmem>>, vector<1x256xf32>
    %c0_1 = arith.constant 0 : index
    %c0_2 = arith.constant 0 : index
    %1 = vector.load %arg1[%c0_1, %c0_2] : memref<64x128xf32, #tpu.memory_space<vmem>>, vector<64x128xf32>
    %2 = vector.extract_strided_slice %1 {offsets = [0, 0], sizes = [60, 10], strides = [1, 1]} : vector<64x128xf32> to vector<60x10xf32>
    %3 = vector.extract_strided_slice %1 {offsets = [0, 10], sizes = [60, 1], strides = [1, 1]} : vector<64x128xf32> to vector<60x1xf32>
    %4 = vector.extract_strided_slice %1 {offsets = [0, 11], sizes = [60, 1], strides = [1, 1]} : vector<64x128xf32> to vector<60x1xf32>
    %5 = vector.extract_strided_slice %1 {offsets = [0, 12], sizes = [10, 1], strides = [1, 1]} : vector<64x128xf32> to vector<10x1xf32>
    %6 = vector.extract_strided_slice %1 {offsets = [0, 13], sizes = [10, 1], strides = [1, 1]} : vector<64x128xf32> to vector<10x1xf32>
    %7 = vector.extract_strided_slice %1 {offsets = [0, 14], sizes = [1, 1], strides = [1, 1]} : vector<64x128xf32> to vector<1x1xf32>
    %8 = vector.broadcast %5 : vector<10x1xf32> to vector<10x256xf32>
    %9 = vector.broadcast %0 : vector<1x256xf32> to vector<10x256xf32>
    %10 = arith.mulf %8, %9 : vector<10x256xf32>
    %11 = vector.broadcast %6 : vector<10x1xf32> to vector<10x256xf32>
    %12 = arith.addf %10, %11 : vector<10x256xf32>
    %cst = arith.constant 5.000000e-01 : f32
    %13 = vector.broadcast %cst : f32 to vector<10x256xf32>
    %14 = arith.mulf %13, %12 : vector<10x256xf32>
    %15 = math.tanh %14 : vector<10x256xf32>
    %cst_3 = arith.constant 1.000000e+00 : f32
    %16 = vector.broadcast %cst_3 : f32 to vector<10x256xf32>
    %17 = arith.addf %15, %16 : vector<10x256xf32>
    %cst_4 = arith.constant 5.000000e-01 : f32
    %18 = vector.broadcast %cst_4 : f32 to vector<10x256xf32>
    %19 = arith.mulf %18, %17 : vector<10x256xf32>
    %cst_5 = arith.constant dense<0.000000e+00> : vector<60x256xf32>
    %20 = tpu.matmul %2, %19, %cst_5 {dimension_numbers = #tpu.dot_dimension_numbers<[1], [0], [0], [1], [0, 0, 1, 1], [], []>} : vector<60x10xf32>, vector<10x256xf32>, vector<60x256xf32> -> vector<60x256xf32>
    %21 = vector.broadcast %3 : vector<60x1xf32> to vector<60x256xf32>
    %22 = arith.addf %20, %21 : vector<60x256xf32>
    %cst_6 = arith.constant 5.000000e-01 : f32
    %23 = vector.broadcast %cst_6 : f32 to vector<60x256xf32>
    %24 = arith.mulf %23, %22 : vector<60x256xf32>
    %25 = math.tanh %24 : vector<60x256xf32>
    %cst_7 = arith.constant 1.000000e+00 : f32
    %26 = vector.broadcast %cst_7 : f32 to vector<60x256xf32>
    %27 = arith.addf %25, %26 : vector<60x256xf32>
    %cst_8 = arith.constant 5.000000e-01 : f32
    %28 = vector.broadcast %cst_8 : f32 to vector<60x256xf32>
    %29 = arith.mulf %28, %27 : vector<60x256xf32>
    %30 = vector.broadcast %4 : vector<60x1xf32> to vector<60x256xf32>
    %31 = arith.mulf %30, %29 : vector<60x256xf32>
    %cst_9 = arith.constant dense<0.000000e+00> : vector<256xf32>
    %32 = vector.multi_reduction <add>, %31, %cst_9 [0] : vector<60x256xf32> to vector<256xf32>
    %33 = vector.shape_cast %32 : vector<256xf32> to vector<1x256xf32>
    %34 = vector.broadcast %7 : vector<1x1xf32> to vector<1x256xf32>
    %35 = arith.addf %33, %34 : vector<1x256xf32>
    %c0_10 = arith.constant 0 : index
    %c0_11 = arith.constant 0 : index
    %36 = vector.load %arg2[%c0_10, %c0_11] : memref<1x256xf32, #tpu.memory_space<vmem>>, vector<1x256xf32>
    tpu.vector_store %arg2[%c0_10, %c0_11], %35 {strides = array<i32>} : memref<1x256xf32, #tpu.memory_space<vmem>>, vector<1x256xf32>,
    return
  }
}

</mosaic_0001>

<bundles_post_ra>
// kernel: mlp_forward.1
= control target key start
LH: loop header
LB: loop body
LE: loop exit
PB: predicated region body
PF: predicated region fallthrough
CT: control target
= control target key end

     0   :  { %7 = vsyncpa [#allocation3], 0  ;;  %s742_s0 = inlined_call_operand.hbm [shape: f32[1,256], index: 0, kind: input, shape index: {}]   ;;  %s743_s1 = inlined_call_operand.hbm [shape: f32[64,128], index: 1, kind: input, shape index: {}]   ;;  %s744_s2 = inlined_call_operand.hbm [shape: f32[1,256], index: 2, kind: output, shape index: {}]  }
   0x1   :  { %8 = vsyncpa [#allocation6], 0 }
   0x2   :  { %9 = vsyncpa [#allocation4], 0  ;;  %s611_s9 = smov [#allocation2]   ;;  %s612_s11 = smov [#allocation5]  }
   0x3   :  { %s16_s10 = sshll.u32 %s611_s9, 4  ;;  %s25_s12 = sshll.u32 %s612_s11, 4  ;;  %s17_s10 = int_to_ptr.vmem [resolvable:$true] %s16_s10  ;;  %s639_s12 = int_to_ptr.vmem [resolvable:$true] %s25_s12 }
   0x4   :  { %s539_s15 = scalar_lea.hbm %s742_s0, 32 }
   0x5   :  { %p540_p0 = scmp.ne.s32.totalorder %s742_s0, %s539_s15  ;;  %p543_p1 = scmp.lt.u32.totalorder %s539_s15, %s742_s0 }
   0x7   :  { %p545_p2 = pnand %p543_p1, %p540_p0 }
   0x9   :  { %548 = shalt.err (!%p545_p2)
}
   0xa   :  { %s549_s20 = scalar_lea.vmem %s17_s10, 32  ;;  %p554_p4 = scmp.lt.s32.totalorder %s17_s10, %s17_s10 }
   0xb   :  { %p550_p3 = scmp.ne.s32.totalorder %s17_s10, %s549_s20  ;;  %p555_p5 = scmp.lt.s32.totalorder %s549_s20, %s549_s20 }
   0xd   :  { %p556_p6 = por %p555_p5, %p554_p4 }
   0xf   :  { %p557_p7 = pnand %p556_p6, %p550_p3 }
  0x11   :  { %560 = shalt.err (!%p557_p7)
}
  0x12   :  { %19 = dma.hbm_to_vmem [thread:$0]  %s742_s0, 32, %s17_s10, [#allocation3]  }
  0x13   :  { %s561_s25 = scalar_lea.hbm %s743_s1, 1024 }
  0x14   :  { %p562_p8 = scmp.ne.s32.totalorder %s743_s1, %s561_s25  ;;  %p565_p9 = scmp.lt.u32.totalorder %s561_s25, %s743_s1 }
  0x16   :  { %p567_p10 = pnand %p565_p9, %p562_p8 }
  0x18   :  { %570 = shalt.err (!%p567_p10)
}
  0x19   :  { %s571_s30 = scalar_lea.vmem %s639_s12, 1024  ;;  %p576_p12 = scmp.lt.s32.totalorder %s639_s12, %s639_s12 }
  0x1a   :  { %p572_p11 = scmp.ne.s32.totalorder %s639_s12, %s571_s30  ;;  %p577_p13 = scmp.lt.s32.totalorder %s571_s30, %s571_s30 }
  0x1c   :  { %p578_p0 = por %p577_p13, %p576_p12 }
  0x1e   :  { %p579_p1 = pnand %p578_p0, %p572_p11 }
  0x20   :  { %582 = shalt.err (!%p579_p1)
}
  0x21   :  { %s613_s0 = smov 128   ;;  %s614_s3 = smov 8  }
  0x22   :  { %31 = dma.hbm_to_vmem [thread:$0]  %s743_s1, 1024, %s639_s12, [#allocation6], %s613_s0, %s613_s0, %s614_s3  }
  0x23   :  { %605 = dma.done.wait [#allocation3], 32  }
  0x24   :  { %606 = vsyncadd [#allocation3], 4294967264 }
  0x25   :  { %607 = dma.done.wait [#allocation6], 1024  }
  0x26   :  { %608 = vsyncadd [#allocation6], 4294966272  ;;  %v615_v0 = vmov 13   ;;  %v616_v1 = vmov 12   ;;  %v670_v2 = vld [vmem:[#allocation5] sm:$0xff]  ;;  %v674_v3 = vld [vmem:[#allocation5 + $0x8] sm:$0xff]  ;;  %v58_v14 = vlaneseq }
  0x27   :  { %493 = vset.pattern.permute.xlu1 %v615_v0  ;;  %492 = vset.pattern.permute.xlu0 %v616_v1  ;;  %v617_v4 = vmov 0.0   ;;  %v618_v5 = vmov 10   ;;  %v682_v6 = vld [vmem:[#allocation5 + $0x10] sm:$0xff]  ;;  %v684_v7 = vld [vmem:[#allocation5 + $0x18] sm:$0xff]  ;;  %v688_v8 = vld [vmem:[#allocation5 + $0x20] sm:$0xff]  ;;  %v619_v12 = vmov 11  }
  0x28   :  { %73 = vperm.xlu1 %493, %v670_v2   ;;  %49 = vperm.xlu0 %492, %v670_v2   ;;  %v690_v9 = vld [vmem:[#allocation5 + $0x28] sm:$0xff]  ;;  %v694_v10 = vld [vmem:[#allocation5 + $0x30] sm:$0xff]  ;;  %v696_v11 = vld [vmem:[#allocation5 + $0x38] sm:$0xff]  ;;  %v620_v13 = vmov 14   ;;  %v710_v15 = vshrl.u32 %v58_v14, 7  ;;  %vm155_vm0 = vcmask 1041408  }
  0x29   :  { %226 = vmatprep.mubr.f32.mxu0 %v617_v4  ;;  %250 = vmatprep.mubr.f32.mxu1 %v617_v4  ;;  %v38_v18 = vld [vmem:[#allocation2] sm:$0x3]  ;;  %vm621_vm1 = vmmov 1   ;;  %vm138_vm3 = vcmask 80896   ;;  %vm393_vm4 = vcmask 1043456   ;;  %s623_s1 = smov [#allocation7]  }
  0x2a   :  { %v60_v16 = vsub.s32 0, %v710_v15  ;;  %v64_v17 = vsub.s32 1, %v710_v15  ;;  %vm472_vm2 = vmpackc.low %vm155_vm0, %vm621_vm1  ;;  %s451_s6 = sshll.u32 %s623_s1, 4  ;;  %vm442_vm5 = vcmp.lt.s32.totalorder %v58_v14, 256  ;;  %s452_s6 = int_to_ptr.vmem [resolvable:$true] %s451_s6 }
  0x2b   :  { %s583_s7 = scalar_lea.vmem %s452_s6, 32  ;;  %p588_p3 = scmp.lt.s32.totalorder %s452_s6, %s452_s6 }
  0x2c   :  { %77 = vperm.xlu1 %493, %v674_v3   ;;  %54 = vperm.xlu0 %492, %v674_v3   ;;  %v61_v19 = vrot.slane %v38_v18, %v60_v16  ;;  %v65_v20 = vrot.slane %v38_v18, %v64_v17  ;;  %p584_p2 = scmp.ne.s32.totalorder %s452_s6, %s583_s7  ;;  %p589_p4 = scmp.lt.s32.totalorder %s583_s7, %s583_s7 }
  0x2e   :  { %p590_p5 = por %p589_p4, %p588_p3 }
  0x30   :  { %495 = vset.pattern.permute.xlu1 %v618_v5  ;;  %494 = vset.pattern.permute.xlu0 %v618_v5  ;;  %p591_p6 = pnand %p590_p5, %p584_p2 }
  0x31   :  { %105 = vperm.xlu1 %495, %v674_v3   ;;  %101 = vperm.xlu0 %494, %v670_v2  }
  0x35   :  { %110 = vperm.xlu1 %495, %v682_v6   ;;  %115 = vperm.xlu0 %494, %v684_v7  }
  0x39   :  { %120 = vperm.xlu1 %495, %v688_v8   ;;  %125 = vperm.xlu0 %494, %v690_v9  }
  0x3d   :  { %130 = vperm.xlu1 %495, %v694_v10   ;;  %135 = vperm.xlu0 %494, %v696_v11  }
  0x41   :  { %496 = vset.pattern.permute.xlu1 %v619_v12  ;;  %497 = vset.pattern.permute.xlu0 %v619_v12 }
  0x42   :  { %340 = vperm.xlu1 %496, %v670_v2   ;;  %344 = vperm.xlu0 %497, %v674_v3  }
  0x46   :  { %348 = vperm.xlu1 %496, %v682_v6   ;;  %356 = vperm.xlu0 %497, %v688_v8  }
  0x4a   :  { %352 = vperm.xlu1 %496, %v684_v7   ;;  %364 = vperm.xlu0 %497, %v694_v10  }
  0x4e   :  { %360 = vperm.xlu1 %496, %v690_v9   ;;  %498 = vset.pattern.permute.xlu0 %v620_v13 }
  0x4f   :  { %417 = vperm.xlu0 %498, %v670_v2  }
  0x52   :  { %368 = vperm.xlu1 %496, %v696_v11  }
  0xa7   :  { %v74_v21 = vpop.permute.xlu1 %73  ;;  %v50_v22 = vpop.permute.xlu0 %49 }
  0xa8   :  { %v68_v23 = vmul.f32 %v61_v19, %v50_v22  ;;  %v69_v24 = vmul.f32 %v65_v20, %v50_v22 }
  0xaa   :  { %v80_v25 = vadd.f32 %v74_v21, %v68_v23  ;;  %v81_v26 = vadd.f32 %v74_v21, %v69_v24 }
  0xab   :  { %v55_v27 = vpop.permute.xlu0 %54  ;;  %v78_v32 = vpop.permute.xlu1 %77 }
  0xac   :  { %v84_v28 = vmul.f32 0.5, %v80_v25  ;;  %v85_v29 = vmul.f32 0.5, %v81_v26  ;;  %v70_v30 = vmul.f32 %v61_v19, %v55_v27  ;;  %v71_v31 = vmul.f32 %v65_v20, %v55_v27 }
  0xae   :  { %499 = vtanh.f32 %v84_v28  ;;  %v82_v33 = vadd.f32 %v78_v32, %v70_v30  ;;  %v83_v34 = vadd.f32 %v78_v32, %v71_v31 }
  0xaf   :  { %501 = vtanh.f32 %v85_v29 }
  0xb0   :  { %v86_v35 = vmul.f32 0.5, %v82_v33  ;;  %v87_v36 = vmul.f32 0.5, %v83_v34  ;;  %v106_v51 = vpop.permute.xlu1 %105  ;;  %v102_v52 = vpop.permute.xlu0 %101 }
  0xb2   :  { %503 = vtanh.f32 %v86_v35 }
  0xb3   :  { %505 = vtanh.f32 %v87_v36 }
  0xb4   :  { %v111_v53 = vpop.permute.xlu1 %110  ;;  %v116_v54 = vpop.permute.xlu0 %115 }
  0xb8   :  { %v500_v37 = vpop.eup %499  ;;  %v121_v55 = vpop.permute.xlu1 %120 }
  0xb9   :  { %v502_v38 = vpop.eup %501  ;;  %v92_v39 = vadd.f32 1.0, %v500_v37  ;;  %v126_v0 = vpop.permute.xlu0 %125 }
  0xba   :  { %v93_v41 = vadd.f32 1.0, %v502_v38 }
  0xbb   :  { %v96_v45 = vmul.f32 0.5, %v92_v39 }
  0xbc   :  { %v504_v40 = vpop.eup %503  ;;  %v97_v47 = vmul.f32 0.5, %v93_v41 }
  0xbd   :  { %v506_v42 = vpop.eup %505  ;;  %v94_v43 = vadd.f32 1.0, %v504_v40  ;;  %v136_v29 = vpop.permute.xlu0 %135 }
  0xbe   :  { %v95_v44 = vadd.f32 1.0, %v506_v42 }
  0xbf   :  { %v98_v46 = vmul.f32 0.5, %v94_v43 }
  0xc0   :  { %v99_v48 = vmul.f32 0.5, %v95_v44 }
  0xc1   :  { %v474_v49 = vpack.c.bf16 %v98_v46, %v96_v45 }
  0xc2   :  { %v471_v50 = vpack.c.bf16 %v99_v48, %v97_v47 }
  0xc4   :  { %473 = vmatprep.subr.msk.bf16.mxu0 %vm472_vm2, %v471_v50  ;;  %477 = vmatprep.subr.msk.bf16.mxu1 %vm472_vm2, %v471_v50 }
  0xc5   :  { %476 = vmatpush1.bf16.msk.msra.mxu0 %vm472_vm2, %v474_v49  ;;  %478 = vmatpush1.bf16.msk.msra.mxu1 %vm472_vm2, %v474_v49 }
  0xc8   :  { %463 = vmatmul.mubr.msk.f32.vlgmr.msra.gmra.mrb[0].mxu0 %vm138_vm3, %v670_v2  ;;  %467 = vmatmul.mubr.msk.f32.vlgmr.msra.gmra.mrb[0].mxu1 %vm138_vm3, %v688_v8 }
  0xc9   :  { %232 = vmatprep.mubr.f32.mxu0 %v617_v4  ;;  %256 = vmatprep.mubr.f32.mxu1 %v617_v4 }
  0xcc   :  { %464 = vmatmul.mubr.msk.f32.gmra.mrb[2].mxu0 %vm138_vm3, %v674_v3  ;;  %468 = vmatmul.mubr.msk.f32.gmra.mrb[2].mxu1 %vm138_vm3, %v690_v9  ;;  %v131_v3 = vpop.permute.xlu1 %130 }
  0xcd   :  { %238 = vmatprep.mubr.f32.mxu0 %v617_v4  ;;  %262 = vmatprep.mubr.f32.mxu1 %v617_v4 }
  0xd0   :  { %465 = vmatmul.mubr.msk.f32.gmra.mrb[4].mxu0 %vm138_vm3, %v682_v6  ;;  %469 = vmatmul.mubr.msk.f32.gmra.mrb[4].mxu1 %vm138_vm3, %v694_v10  ;;  %v341_v28 = vpop.permute.xlu1 %340 }
  0xd1   :  { %244 = vmatprep.mubr.f32.mxu0 %v617_v4  ;;  %268 = vmatprep.mubr.f32.mxu1 %v617_v4 }
  0xd4   :  { %466 = vmatmul.mubr.msk.f32.gmra.mrb[6].mxu0 %vm138_vm3, %v684_v7  ;;  %470 = vmatmul.mubr.msk.f32.gmra.mrb[6].mxu1 %vm138_vm3, %v696_v11 }
 0x19b   :  { %v228_v56 = vpop.f32.mrb[0].mxu0  ;;  %v252_v57 = vpop.f32.mrb[0].mxu1 }
 0x19c   :  { %v229_v58 = vadd.f32 %v228_v56, %v102_v52  ;;  %v230_v59 = vpop.f32.mrb[1].mxu0  ;;  %v253_v60 = vadd.f32 %v252_v57, %v121_v55  ;;  %v254_v61 = vpop.f32.mrb[1].mxu1 }
 0x19d   :  { %v231_v62 = vadd.f32 %v230_v59, %v102_v52  ;;  %v255_v63 = vadd.f32 %v254_v61, %v121_v55  ;;  %v349_v52 = vpop.permute.xlu1 %348 }
 0x19e   :  { %v275_v1 = vmul.f32 0.5, %v229_v58  ;;  %v283_v2 = vmul.f32 0.5, %v253_v60 }
 0x19f   :  { %v276_v4 = vmul.f32 0.5, %v231_v62  ;;  %v284_v5 = vmul.f32 0.5, %v255_v63  ;;  %v234_v6 = vpop.f32.mrb[2].mxu0  ;;  %v258_v7 = vpop.f32.mrb[2].mxu1 }
 0x1a0   :  { %507 = vtanh.f32 %v275_v1  ;;  %v235_v8 = vadd.f32 %v234_v6, %v106_v51  ;;  %v259_v9 = vadd.f32 %v258_v7, %v126_v0  ;;  %v236_v10 = vpop.f32.mrb[3].mxu0  ;;  %v260_v11 = vpop.f32.mrb[3].mxu1 }
 0x1a1   :  { %509 = vtanh.f32 %v276_v4  ;;  %v237_v12 = vadd.f32 %v236_v10, %v106_v51  ;;  %v261_v13 = vadd.f32 %v260_v11, %v126_v0  ;;  %v345_v63 = vpop.permute.xlu0 %344 }
 0x1a2   :  { %511 = vtanh.f32 %v283_v2  ;;  %v277_v16 = vmul.f32 0.5, %v235_v8  ;;  %v285_v17 = vmul.f32 0.5, %v259_v9 }
 0x1a3   :  { %513 = vtanh.f32 %v284_v5  ;;  %v278_v18 = vmul.f32 0.5, %v237_v12  ;;  %v286_v19 = vmul.f32 0.5, %v261_v13  ;;  %v240_v20 = vpop.f32.mrb[4].mxu0  ;;  %v264_v21 = vpop.f32.mrb[4].mxu1 }
 0x1a4   :  { %515 = vtanh.f32 %v277_v16  ;;  %v241_v22 = vadd.f32 %v240_v20, %v111_v53  ;;  %v265_v23 = vadd.f32 %v264_v21, %v131_v3  ;;  %v242_v24 = vpop.f32.mrb[5].mxu0  ;;  %v266_v25 = vpop.f32.mrb[5].mxu1 }
 0x1a5   :  { %517 = vtanh.f32 %v285_v17  ;;  %v243_v26 = vadd.f32 %v242_v24, %v111_v53  ;;  %v267_v27 = vadd.f32 %v266_v25, %v131_v3  ;;  %v353_v3 = vpop.permute.xlu1 %352 }
 0x1a6   :  { %519 = vtanh.f32 %v278_v18  ;;  %v279_v30 = vmul.f32 0.5, %v241_v22  ;;  %v287_v31 = vmul.f32 0.5, %v265_v23 }
 0x1a7   :  { %521 = vtanh.f32 %v286_v19  ;;  %v280_v32 = vmul.f32 0.5, %v243_v26  ;;  %v288_v33 = vmul.f32 0.5, %v267_v27  ;;  %v246_v34 = vpop.f32.mrb[6].mxu0  ;;  %v270_v35 = vpop.f32.mrb[6].mxu1 }
 0x1a8   :  { %523 = vtanh.f32 %v279_v30  ;;  %v247_v36 = vadd.f32 %v246_v34, %v116_v54  ;;  %v271_v37 = vadd.f32 %v270_v35, %v136_v29  ;;  %v248_v38 = vpop.f32.mrb[7].mxu0  ;;  %v272_v39 = vpop.f32.mrb[7].mxu1 }
 0x1a9   :  { %525 = vtanh.f32 %v287_v31  ;;  %v249_v40 = vadd.f32 %v248_v38, %v116_v54  ;;  %v273_v41 = vadd.f32 %v272_v39, %v136_v29  ;;  %v357_v27 = vpop.permute.xlu0 %356  ;;  %v361_v34 = vpop.permute.xlu1 %360 }
 0x1aa   :  { %v508_v42 = vpop.eup %507  ;;  %527 = vtanh.f32 %v280_v32  ;;  %v281_v43 = vmul.f32 0.5, %v247_v36  ;;  %v289_v44 = vmul.f32 0.5, %v271_v37 }
 0x1ab   :  { %v510_v45 = vpop.eup %509  ;;  %v307_v46 = vadd.f32 1.0, %v508_v42  ;;  %529 = vtanh.f32 %v288_v33  ;;  %v282_v47 = vmul.f32 0.5, %v249_v40  ;;  %v290_v48 = vmul.f32 0.5, %v273_v41 }
 0x1ac   :  { %v512_v49 = vpop.eup %511  ;;  %v308_v50 = vadd.f32 1.0, %v510_v45  ;;  %531 = vtanh.f32 %v281_v43 }
 0x1ad   :  { %v514_v51 = vpop.eup %513  ;;  %533 = vtanh.f32 %v289_v44  ;;  %v323_v54 = vmul.f32 0.5, %v307_v46  ;;  %v315_v8 = vadd.f32 1.0, %v512_v49 }
 0x1ae   :  { %v516_v53 = vpop.eup %515  ;;  %535 = vtanh.f32 %v282_v47  ;;  %v324_v58 = vmul.f32 0.5, %v308_v50  ;;  %v316_v18 = vadd.f32 1.0, %v514_v51  ;;  %v365_v51 = vpop.permute.xlu0 %364 }
 0x1af   :  { %v518_v55 = vpop.eup %517  ;;  %537 = vtanh.f32 %v290_v48  ;;  %v309_v56 = vadd.f32 1.0, %v516_v53  ;;  %v371_v1 = vmul.f32 %v341_v28, %v323_v54  ;;  %v331_v29 = vmul.f32 0.5, %v315_v8  ;;  %v369_v53 = vpop.permute.xlu1 %368 }
 0x1b0   :  { %v520_v57 = vpop.eup %519  ;;  %v372_v7 = vmul.f32 %v341_v28, %v324_v58  ;;  %v317_v17 = vadd.f32 1.0, %v518_v55  ;;  %v332_v38 = vmul.f32 0.5, %v316_v18 }
 0x1b1   :  { %v522_v59 = vpop.eup %521  ;;  %v310_v60 = vadd.f32 1.0, %v520_v57  ;;  %v325_v61 = vmul.f32 0.5, %v309_v56  ;;  %v379_v44 = vmul.f32 %v357_v27, %v331_v29 }
 0x1b2   :  { %v524_v62 = vpop.eup %523  ;;  %v318_v25 = vadd.f32 1.0, %v522_v59  ;;  %v333_v36 = vmul.f32 0.5, %v317_v17  ;;  %v380_v50 = vmul.f32 %v357_v27, %v332_v38 }
 0x1b3   :  { %v526_v0 = vpop.eup %525  ;;  %v311_v2 = vadd.f32 1.0, %v524_v62  ;;  %v326_v4 = vmul.f32 0.5, %v310_v60  ;;  %v373_v5 = vmul.f32 %v345_v63, %v325_v61 }
 0x1b4   :  { %v528_v6 = vpop.eup %527  ;;  %v319_v28 = vadd.f32 1.0, %v526_v0  ;;  %v334_v46 = vmul.f32 0.5, %v318_v25 }
 0x1b5   :  { %v530_v9 = vpop.eup %529  ;;  %v312_v10 = vadd.f32 1.0, %v528_v6  ;;  %v327_v11 = vmul.f32 0.5, %v311_v2  ;;  %v374_v12 = vmul.f32 %v345_v63, %v326_v4  ;;  %v387_v13 = vadd.f32 %v373_v5, %v371_v1 }
 0x1b6   :  { %v532_v16 = vpop.eup %531  ;;  %v320_v42 = vadd.f32 1.0, %v530_v9  ;;  %v335_v48 = vmul.f32 0.5, %v319_v28  ;;  %v382_v58 = vmul.f32 %v361_v34, %v334_v46 }
 0x1b7   :  { %v534_v19 = vpop.eup %533  ;;  %v328_v20 = vmul.f32 0.5, %v312_v10  ;;  %v375_v21 = vmul.f32 %v349_v52, %v327_v11  ;;  %v313_v22 = vadd.f32 1.0, %v532_v16  ;;  %v402_v23 = vadd.f32 %v374_v12, %v372_v7 }
 0x1b8   :  { %v536_v24 = vpop.eup %535  ;;  %v321_v26 = vadd.f32 1.0, %v534_v19  ;;  %v336_v56 = vmul.f32 0.5, %v320_v42  ;;  %v383_v60 = vmul.f32 %v365_v51, %v335_v48  ;;  %v622_v12 = vmov 1966171168  }
 0x1b9   :  { %v538_v30 = vpop.eup %537  ;;  %v376_v31 = vmul.f32 %v349_v52, %v328_v20  ;;  %v314_v32 = vadd.f32 1.0, %v536_v24  ;;  %v329_v33 = vmul.f32 0.5, %v313_v22  ;;  %v388_v35 = vadd.f32 %v387_v13, %v375_v21  ;;  %v418_v20 = vpop.permute.xlu0 %417 }
 0x1ba   :  { %v322_v37 = vadd.f32 1.0, %v538_v30  ;;  %v337_v43 = vmul.f32 0.5, %v321_v26  ;;  %v381_v52 = vmul.f32 %v361_v34, %v333_v36  ;;  %v384_v63 = vmul.f32 %v365_v51, %v336_v56 }
 0x1bb   :  { %v330_v39 = vmul.f32 0.5, %v314_v32  ;;  %v377_v40 = vmul.f32 %v353_v3, %v329_v33  ;;  %v403_v41 = vadd.f32 %v402_v23, %v376_v31  ;;  %v426_v13 = vunpack.c.l.s4 %v622_v12 }
 0x1bc   :  { %v338_v49 = vmul.f32 0.5, %v322_v37  ;;  %v385_v57 = vmul.f32 %v369_v53, %v337_v43 }
 0x1bd   :  { %v378_v45 = vmul.f32 %v353_v3, %v330_v39  ;;  %v389_v47 = vadd.f32 %v388_v35, %v377_v40  ;;  %v427_v21 = vunpack.c.0.s8 %v426_v13 }
 0x1be   :  { %v386_v62 = vmul.f32 %v369_v53, %v338_v49  ;;  %v394_v2 = vsel %vm393_vm4, %v385_v57, 0.0 }
 0x1bf   :  { %v390_v55 = vadd.f32 %v389_v47, %v379_v44  ;;  %v404_v54 = vadd.f32 %v403_v41, %v378_v45  ;;  %v430_v26 = vsub.s32 %v427_v21, %v710_v15 }
 0x1c0   :  { %v408_v5 = vsel %vm393_vm4, %v386_v62, 0.0 }
 0x1c1   :  { %v405_v59 = vadd.f32 %v404_v54, %v380_v50  ;;  %v391_v61 = vadd.f32 %v390_v55, %v381_v52 }
 0x1c3   :  { %v392_v0 = vadd.f32 %v391_v61, %v383_v60  ;;  %v406_v1 = vadd.f32 %v405_v59, %v382_v58 }
 0x1c5   :  { %v395_v3 = vadd.f32 %v394_v2, %v392_v0  ;;  %v407_v4 = vadd.f32 %v406_v1, %v384_v63 }
 0x1c7   :  { %v396_v6 = vrot.slane %v395_v3, 4  ;;  %v409_v7 = vadd.f32 %v408_v5, %v407_v4 }
 0x1c9   :  { %v410_v8 = vrot.slane %v409_v7, 4  ;;  %v397_v9 = vadd.f32 %v396_v6, %v395_v3 }
 0x1cb   :  { %v398_v10 = vrot.slane %v397_v9, 2  ;;  %v411_v11 = vadd.f32 %v410_v8, %v409_v7 }
 0x1cd   :  { %v399_v16 = vadd.f32 %v398_v10, %v397_v9  ;;  %v412_v17 = vrot.slane %v411_v11, 2 }
 0x1cf   :  { %v400_v18 = vrot.slane %v399_v16, 1  ;;  %v413_v19 = vadd.f32 %v412_v17, %v411_v11 }
 0x1d1   :  { %v401_v22 = vadd.f32 %v400_v18, %v399_v16  ;;  %v414_v23 = vrot.slane %v413_v19, 1 }
 0x1d3   :  { %v415_v24 = vadd.f32 %v414_v23, %v413_v19  ;;  %v420_v25 = vadd.f32 %v418_v20, %v401_v22 }
 0x1d5   :  { %v421_v27 = vadd.f32 %v418_v20, %v415_v24 }
 0x1d7   :  { %v424_v29 = vcombine.low %v420_v25, %v421_v27 }
 0x1d9   :  { %v431_v28 = vrot.slane %v424_v29, %v430_v26 }
 0x1db   :  { %v438_v30 = vrot.slane %v431_v28, %v430_v26 }
 0x1dd   :  { %444 = vst.msk [vmem:[#allocation7] sm:$0x3] %vm442_vm5, %v438_v30 }
 0x1de   :  { %594 = shalt.err (!%p591_p6)
}
 0x1df   :  { %s595_s10 = scalar_lea.hbm %s744_s2, 32 }
 0x1e0   :  { %p596_p7 = scmp.ne.s32.totalorder %s744_s2, %s595_s10  ;;  %p599_p8 = scmp.lt.u32.totalorder %s595_s10, %s744_s2 }
 0x1e2   :  { %p601_p9 = pnand %p599_p8, %p596_p7 }
 0x1e4   :  { %604 = shalt.err (!%p601_p9)
}
 0x1e5   :  { %454 = dma.vmem_to_hbm [thread:$0]  %s452_s6, 32, %s744_s2, [#allocation4]  }
 0x1e6   :  { %609 = dma.done.wait [#allocation4], 32  }
 0x1e7   :  { %610 = vsyncadd [#allocation4], 4294967264 }
 0x1e8   :  { %458 = vsyncpa [#allocation3], 1 }
 0x1e9   :  { %459 = vsyncpa [#allocation6], 1 }
 0x1ea   :  { %460 = vsyncpa [#allocation4], 1 }

</bundles_post_ra>
